<compile_context>
chip_gen: v5e
topology: v5e:2x2
jax: 0.10.0
libtpu: 0.0.40
codegen_flags: <defaults>
</compile_context>

<pallas_src>
import math

import jax
import jax.numpy as jnp
from jax.experimental import pallas as pl
from jax.experimental.pallas import tpu as pltpu


def _coattn_kernel(v_ref, q_ref,
                   WvT_ref, bv_ref, WqT_ref, bq_ref,
                   wv_ref, bwv_ref, wq_ref, bwq_ref,
                   out_v_ref, out_q_ref,
                   wvv_ref):
    level = pl.program_id(1)            # inner (serial) grid axis = hierarchy level

    V = v_ref[...]                      # (BT, Nv, D) image tile (same every level)
    Q = q_ref[0]                        # (BT, Nq, D) question tile of this level
    BT, Nv, D = V.shape
    _, Nq, _ = Q.shape

    # --- W_v V + b_v : depends only on the image tile. Compute once per batch
    # tile (level is the innermost, "arbitrary" axis) and cache in VMEM.
    @pl.when(level == 0)
    def _():
        wvv = jnp.dot(V.reshape(BT * Nv, D), WvT_ref[...],
                      preferred_element_type=jnp.float32) + bv_ref[...]
        wvv_ref[...] = wvv.reshape(BT, Nv, D)

    WvV = wvv_ref[...]                  # (BT, Nv, D)

    # --- W_q Q + b_q : per level; flatten batch into the MXU M dimension.
    WqQ = (jnp.dot(Q.reshape(BT * Nq, D), WqT_ref[...],
                   preferred_element_type=jnp.float32)
           + bq_ref[...]).reshape(BT, Nq, D)

    # Affinity C = tanh(Q V^T)                               (BT, Nq, Nv)
    C = jnp.tanh(jnp.einsum('bqd,bvd->bqv', Q, V,
                            preferred_element_type=jnp.float32))

    # H_v = tanh(W_v V + C^T (W_q Q)) -- contract on q, no explicit transpose.
    H_v = jnp.tanh(WvV + jnp.einsum('bqv,bqd->bvd', C, WqQ,
                                    preferred_element_type=jnp.float32))
    # H_q = tanh(W_q Q + C (W_v V))
    H_q = jnp.tanh(WqQ + jnp.einsum('bqv,bvd->bqd', C, WvV,
                                    preferred_element_type=jnp.float32))

    # 1-output linear heads as lane reductions (avoid degenerate N=1 matmuls).
    wv = wv_ref[...].reshape(1, 1, D)
    wq = wq_ref[...].reshape(1, 1, D)
    bwv = bwv_ref[...].reshape(1, 1, 1)
    bwq = bwq_ref[...].reshape(1, 1, 1)
    s_v = jnp.sum(H_v * wv, axis=2, keepdims=True) + bwv     # (BT, Nv, 1)
    s_q = jnp.sum(H_q * wq, axis=2, keepdims=True) + bwq     # (BT, Nq, 1)

    # Softmax over the token/region axis (PyTorch dim=1 for (B, N, 1)).
    def _softmax_tokens(s):
        m = jnp.max(s, axis=1, keepdims=True)
        e = jnp.exp(s - m)
        return e * pl.reciprocal(jnp.sum(e, axis=1, keepdims=True), approx=False)

    a_v = _softmax_tokens(s_v)                               # (BT, Nv, 1)
    a_q = _softmax_tokens(s_q)                               # (BT, Nq, 1)

    # Attention-weighted pooling -> dense (BT, D) slabs.
    out_v_ref[0] = jnp.sum(a_v * V, axis=1)                  # (BT, D)
    out_q_ref[0] = jnp.sum(a_q * Q, axis=1)                  # (BT, D)


def coattention_pallas(x_img, x_ques_hierarchy, params):
    """Runs the fused co-attention kernel over all hierarchy levels at once."""
    Wv, bv, Wq, bq, wv, bwv, wq, bwq = params
    B, Nv, D = x_img.shape
    L = len(x_ques_hierarchy)
    Nq = x_ques_hierarchy[0].shape[1]
    assert all(q.shape == (B, Nq, D) for q in x_ques_hierarchy), \
        "all hierarchy levels must share (B, Nq, D) to be fused into one call"
    Qs = jnp.stack(x_ques_hierarchy, axis=0)                 # (L, B, Nq, D)

    # Pre-transpose the PyTorch (out, in) weights once on the host so the
    # kernel never re-runs an in-kernel transpose every grid iteration.
    WvT = Wv.T
    WqT = Wq.T

    # Batch tile: several samples per grid step (amortizes the ~0.35us per-step
    # overhead and makes the output tile sublane-dense); must divide B.
    BT = math.gcd(B, 8)
    nbt = B // BT

    out_v, out_q = pl.pallas_call(
        _coattn_kernel,
        out_shape=(jax.ShapeDtypeStruct((L, B, D), jnp.float32),
                   jax.ShapeDtypeStruct((L, B, D), jnp.float32)),
        grid_spec=pltpu.PrefetchScalarGridSpec(
            num_scalar_prefetch=0,
            grid=(nbt, L),                                   # (batch tiles, levels)
            in_specs=[
                pl.BlockSpec((BT, Nv, D), lambda bt, l: (bt, 0, 0)),      # x_img
                pl.BlockSpec((1, BT, Nq, D), lambda bt, l: (l, bt, 0, 0)),  # Qs
                pl.BlockSpec((D, D), lambda bt, l: (0, 0)),               # W_v^T
                pl.BlockSpec((1, D), lambda bt, l: (0, 0)),               # b_v
                pl.BlockSpec((D, D), lambda bt, l: (0, 0)),               # W_q^T
                pl.BlockSpec((1, D), lambda bt, l: (0, 0)),               # b_q
                pl.BlockSpec((1, D), lambda bt, l: (0, 0)),               # w_v
                pl.BlockSpec((1, 1), lambda bt, l: (0, 0)),               # b_wv
                pl.BlockSpec((1, D), lambda bt, l: (0, 0)),               # w_q
                pl.BlockSpec((1, 1), lambda bt, l: (0, 0)),               # b_wq
            ],
            out_specs=(pl.BlockSpec((1, BT, D), lambda bt, l: (l, bt, 0)),
                       pl.BlockSpec((1, BT, D), lambda bt, l: (l, bt, 0))),
            scratch_shapes=[pltpu.VMEM((BT, Nv, D), jnp.float32)],        # cached W_v V
        ),
        compiler_params=pltpu.CompilerParams(
            dimension_semantics=("parallel", "arbitrary")),
    )(x_img, Qs, WvT, bv, WqT, bq, wv, bwv, wq, bwq)

    img_feats = [out_v[l] for l in range(L)]
    quest_feats = [out_q[l] for l in range(L)]
    return img_feats, quest_feats


def coattention_ref(x_img, x_ques_hierarchy, params):
    """Pure-JAX reference mirroring the PyTorch forward pass."""
    Wv, bv, Wq, bq, wv, bwv, wq, bwq = params
    img_feats, quest_feats = [], []
    V = x_img
    for Q in x_ques_hierarchy:
        C = jnp.tanh(jnp.einsum('bqd,bvd->bqv', Q, V))
        WvV = V @ Wv.T + bv[0]
        WqQ = Q @ Wq.T + bq[0]
        H_v = jnp.tanh(WvV + jnp.einsum('bqv,bqd->bvd', C, WqQ))
        H_q = jnp.tanh(WqQ + jnp.einsum('bqv,bvd->bqd', C, WvV))
        a_v = jax.nn.softmax(jnp.einsum('bvd,d->bv', H_v, wv[0]) + bwv[0, 0],
                             axis=1)[..., None]
        a_q = jax.nn.softmax(jnp.einsum('bqd,d->bq', H_q, wq[0]) + bwq[0, 0],
                             axis=1)[..., None]
        img_feats.append(jnp.sum(a_v * V, axis=1))
        quest_feats.append(jnp.sum(a_q * Q, axis=1))
    return img_feats, quest_feats


def init_params(key, hidden_dim):
    """Deterministic PyTorch-Linear-style init (uniform(-1/sqrt(D), 1/sqrt(D)))."""
    D = hidden_dim
    ks = jax.random.split(key, 8)
    s = 1.0 / jnp.sqrt(D)
    u = lambda k, shape: jax.random.uniform(k, shape, jnp.float32, -s, s)
    Wv = u(ks[0], (D, D)); bv = u(ks[1], (1, D))
    Wq = u(ks[2], (D, D)); bq = u(ks[3], (1, D))
    wv = u(ks[4], (1, D)); bwv = u(ks[5], (1, 1))
    wq = u(ks[6], (1, D)); bwq = u(ks[7], (1, 1))
    # Note: self.W_b from __init__ is never used in forward -> not created.
    return (Wv, bv, Wq, bq, wv, bwv, wq, bwq)


if __name__ == "__main__":
    B, Nv, Nq, D = 2, 16, 8, 32
    n_levels = 3

    key = jax.random.PRNGKey(0)
    k_img, k_q, k_p = jax.random.split(key, 3)

    x_img = jax.random.normal(k_img, (B, Nv, D), jnp.float32)
    x_ques_hierarchy = [
        jax.random.normal(k, (B, Nq, D), jnp.float32)
        for k in jax.random.split(k_q, n_levels)
    ]
    params = init_params(k_p, D)

    img_feats, quest_feats = coattention_pallas(x_img, x_ques_hierarchy, params)
    jax.block_until_ready(img_feats)
    jax.block_until_ready(quest_feats)

    ref_img, ref_quest = coattention_ref(x_img, x_ques_hierarchy, params)
    for a, b in zip(img_feats, ref_img):
        assert jnp.allclose(a, b, rtol=1e-4, atol=1e-4)
    for a, b in zip(quest_feats, ref_quest):
        assert jnp.allclose(a, b, rtol=1e-4, atol=1e-4)

    print("KERNEL_OK")
</pallas_src>

<mosaic_0001>
module attributes {stable_mosaic.version = 11 : i64} {
  func.func @_coattn_kernel(%arg0: i32, %arg1: i32, %arg2: memref<2x16x32xf32, #tpu.memory_space<vmem>>, %arg3: memref<1x2x8x32xf32, #tpu.memory_space<vmem>>, %arg4: memref<32x32xf32, #tpu.memory_space<vmem>>, %arg5: memref<1x32xf32, #tpu.memory_space<vmem>>, %arg6: memref<32x32xf32, #tpu.memory_space<vmem>>, %arg7: memref<1x32xf32, #tpu.memory_space<vmem>>, %arg8: memref<1x32xf32, #tpu.memory_space<vmem>>, %arg9: memref<1x1xf32, #tpu.memory_space<vmem>>, %arg10: memref<1x32xf32, #tpu.memory_space<vmem>>, %arg11: memref<1x1xf32, #tpu.memory_space<vmem>>, %arg12: memref<1x2x32xf32, #tpu.memory_space<vmem>>, %arg13: memref<1x2x32xf32, #tpu.memory_space<vmem>>, %arg14: memref<2x16x32xf32, #tpu.memory_space<vmem>>) attributes {dimension_semantics = [#tpu.dimension_semantics<parallel>, #tpu.dimension_semantics<arbitrary>], iteration_bounds = array<i64: 1, 3>, scalar_prefetch = 0 : i64, scratch_operands = 1 : i64, tpu.core_type = #tpu.core_type<tc>, window_params = [{transform_indices = @transform_0, window_bounds = array<i64: 2, 16, 32>}, {transform_indices = @transform_1, window_bounds = array<i64: 1, 2, 8, 32>}, {pipeline_mode = #tpu.pipeline_mode<synchronous>, transform_indices = @transform_2, window_bounds = array<i64: 32, 32>}, {pipeline_mode = #tpu.pipeline_mode<synchronous>, transform_indices = @transform_3, window_bounds = array<i64: 1, 32>}, {pipeline_mode = #tpu.pipeline_mode<synchronous>, transform_indices = @transform_4, window_bounds = array<i64: 32, 32>}, {pipeline_mode = #tpu.pipeline_mode<synchronous>, transform_indices = @transform_5, window_bounds = array<i64: 1, 32>}, {pipeline_mode = #tpu.pipeline_mode<synchronous>, transform_indices = @transform_6, window_bounds = array<i64: 1, 32>}, {pipeline_mode = #tpu.pipeline_mode<synchronous>, transform_indices = @transform_7, window_bounds = array<i64: 1, 1>}, {pipeline_mode = #tpu.pipeline_mode<synchronous>, transform_indices = @transform_8, window_bounds = array<i64: 1, 32>}, {pipeline_mode = #tpu.pipeline_mode<synchronous>, transform_indices = @transform_9, window_bounds = array<i64: 1, 1>}, {transform_indices = @transform_10, window_bounds = array<i64: 1, 2, 32>}, {transform_indices = @transform_11, window_bounds = array<i64: 1, 2, 32>}]} {
    %c0 = arith.constant 0 : index
    %c0_0 = arith.constant 0 : index
    %c0_1 = arith.constant 0 : index
    %0 = vector.load %arg2[%c0, %c0_0, %c0_1] : memref<2x16x32xf32, #tpu.memory_space<vmem>>, vector<2x16x32xf32>
    %c0_2 = arith.constant 0 : index
    %c0_3 = arith.constant 0 : index
    %c0_4 = arith.constant 0 : index
    %c0_5 = arith.constant 0 : index
    %1 = vector.load %arg3[%c0_2, %c0_3, %c0_4, %c0_5] : memref<1x2x8x32xf32, #tpu.memory_space<vmem>>, vector<1x2x8x32xf32>
    %2 = vector.shape_cast %1 : vector<1x2x8x32xf32> to vector<2x8x32xf32>
    %c0_i32 = arith.constant 0 : i32
    %3 = arith.cmpi eq, %arg1, %c0_i32 : i32
    %4 = arith.extui %3 : i1 to i32
    %c0_i32_6 = arith.constant 0 : i32
    %5 = arith.cmpi ne, %4, %c0_i32_6 : i32
    scf.if %5 {
      %74 = vector.shape_cast %0 : vector<2x16x32xf32> to vector<32x32xf32>
      %c0_39 = arith.constant 0 : index
      %c0_40 = arith.constant 0 : index
      %75 = vector.load %arg4[%c0_39, %c0_40] : memref<32x32xf32, #tpu.memory_space<vmem>>, vector<32x32xf32>
      %cst_41 = arith.constant dense<0.000000e+00> : vector<32x32xf32>
      %76 = tpu.matmul %74, %75, %cst_41 {dimension_numbers = #tpu.dot_dimension_numbers<[1], [0], [0], [1], [0, 0, 1, 1], [], []>} : vector<32x32xf32>, vector<32x32xf32>, vector<32x32xf32> -> vector<32x32xf32>
      %c0_42 = arith.constant 0 : index
      %c0_43 = arith.constant 0 : index
      %77 = vector.load %arg5[%c0_42, %c0_43] : memref<1x32xf32, #tpu.memory_space<vmem>>, vector<1x32xf32>
      %78 = vector.broadcast %77 : vector<1x32xf32> to vector<32x32xf32>
      %79 = arith.addf %76, %78 : vector<32x32xf32>
      %80 = vector.shape_cast %79 : vector<32x32xf32> to vector<2x16x32xf32>
      %c0_44 = arith.constant 0 : index
      %c0_45 = arith.constant 0 : index
      %c0_46 = arith.constant 0 : index
      %81 = vector.load %arg14[%c0_44, %c0_45, %c0_46] : memref<2x16x32xf32, #tpu.memory_space<vmem>>, vector<2x16x32xf32>
      tpu.vector_store %arg14[%c0_44, %c0_45, %c0_46], %80 {strides = array<i32>} : memref<2x16x32xf32, #tpu.memory_space<vmem>>, vector<2x16x32xf32>,
    } else {
    }
    %c0_7 = arith.constant 0 : index
    %c0_8 = arith.constant 0 : index
    %c0_9 = arith.constant 0 : index
    %6 = vector.load %arg14[%c0_7, %c0_8, %c0_9] : memref<2x16x32xf32, #tpu.memory_space<vmem>>, vector<2x16x32xf32>
    %7 = vector.shape_cast %2 : vector<2x8x32xf32> to vector<16x32xf32>
    %c0_10 = arith.constant 0 : index
    %c0_11 = arith.constant 0 : index
    %8 = vector.load %arg6[%c0_10, %c0_11] : memref<32x32xf32, #tpu.memory_space<vmem>>, vector<32x32xf32>
    %cst = arith.constant dense<0.000000e+00> : vector<16x32xf32>
    %9 = tpu.matmul %7, %8, %cst {dimension_numbers = #tpu.dot_dimension_numbers<[1], [0], [0], [1], [0, 0, 1, 1], [], []>} : vector<16x32xf32>, vector<32x32xf32>, vector<16x32xf32> -> vector<16x32xf32>
    %c0_12 = arith.constant 0 : index
    %c0_13 = arith.constant 0 : index
    %10 = vector.load %arg7[%c0_12, %c0_13] : memref<1x32xf32, #tpu.memory_space<vmem>>, vector<1x32xf32>
    %11 = vector.broadcast %10 : vector<1x32xf32> to vector<16x32xf32>
    %12 = arith.addf %9, %11 : vector<16x32xf32>
    %13 = vector.shape_cast %12 : vector<16x32xf32> to vector<2x8x32xf32>
    "tpu.trace_start"() <{level = 10 : i32, message = "bqd,bvd->bqv"}> : () -> ()
    %cst_14 = arith.constant dense<0.000000e+00> : vector<2x8x16xf32>
    %14 = tpu.matmul %2, %0, %cst_14 {dimension_numbers = #tpu.dot_dimension_numbers<[2], [2], [1], [1], [0, 0, 0, 1, 1, 1], [0], [0]>} : vector<2x8x32xf32>, vector<2x16x32xf32>, vector<2x8x16xf32> -> vector<2x8x16xf32>
    "tpu.trace_stop"() : () -> ()
    %15 = math.tanh %14 : vector<2x8x16xf32>
    "tpu.trace_start"() <{level = 10 : i32, message = "bqv,bqd->bvd"}> : () -> ()
    %cst_15 = arith.constant dense<0.000000e+00> : vector<2x16x32xf32>
    %16 = tpu.matmul %15, %13, %cst_15 {dimension_numbers = #tpu.dot_dimension_numbers<[1], [1], [2], [2], [0, 0, 0, 2, 1, 2], [0], [0]>} : vector<2x8x16xf32>, vector<2x8x32xf32>, vector<2x16x32xf32> -> vector<2x16x32xf32>
    "tpu.trace_stop"() : () -> ()
    %17 = arith.addf %6, %16 : vector<2x16x32xf32>
    %18 = math.tanh %17 : vector<2x16x32xf32>
    "tpu.trace_start"() <{level = 10 : i32, message = "bqv,bvd->bqd"}> : () -> ()
    %cst_16 = arith.constant dense<0.000000e+00> : vector<2x8x32xf32>
    %19 = tpu.matmul %15, %6, %cst_16 {dimension_numbers = #tpu.dot_dimension_numbers<[2], [1], [1], [2], [0, 0, 0, 1, 1, 2], [0], [0]>} : vector<2x8x16xf32>, vector<2x16x32xf32>, vector<2x8x32xf32> -> vector<2x8x32xf32>
    "tpu.trace_stop"() : () -> ()
    %20 = arith.addf %13, %19 : vector<2x8x32xf32>
    %21 = math.tanh %20 : vector<2x8x32xf32>
    %c0_17 = arith.constant 0 : index
    %c0_18 = arith.constant 0 : index
    %22 = vector.load %arg8[%c0_17, %c0_18] : memref<1x32xf32, #tpu.memory_space<vmem>>, vector<1x32xf32>
    %23 = vector.shape_cast %22 : vector<1x32xf32> to vector<1x1x32xf32>
    %c0_19 = arith.constant 0 : index
    %c0_20 = arith.constant 0 : index
    %24 = vector.load %arg10[%c0_19, %c0_20] : memref<1x32xf32, #tpu.memory_space<vmem>>, vector<1x32xf32>
    %25 = vector.shape_cast %24 : vector<1x32xf32> to vector<1x1x32xf32>
    %c0_21 = arith.constant 0 : index
    %c0_22 = arith.constant 0 : index
    %26 = vector.load %arg9[%c0_21, %c0_22] : memref<1x1xf32, #tpu.memory_space<vmem>>, vector<1x1xf32>
    %27 = vector.shape_cast %26 : vector<1x1xf32> to vector<1x1x1xf32>
    %c0_23 = arith.constant 0 : index
    %c0_24 = arith.constant 0 : index
    %28 = vector.load %arg11[%c0_23, %c0_24] : memref<1x1xf32, #tpu.memory_space<vmem>>, vector<1x1xf32>
    %29 = vector.shape_cast %28 : vector<1x1xf32> to vector<1x1x1xf32>
    %30 = vector.broadcast %23 : vector<1x1x32xf32> to vector<2x16x32xf32>
    %31 = arith.mulf %18, %30 : vector<2x16x32xf32>
    %cst_25 = arith.constant dense<0.000000e+00> : vector<2x16xf32>
    %32 = vector.multi_reduction <add>, %31, %cst_25 [2] : vector<2x16x32xf32> to vector<2x16xf32>
    %33 = vector.shape_cast %32 : vector<2x16xf32> to vector<2x16x1xf32>
    %34 = vector.broadcast %27 : vector<1x1x1xf32> to vector<2x16x1xf32>
    %35 = arith.addf %33, %34 : vector<2x16x1xf32>
    %36 = vector.broadcast %25 : vector<1x1x32xf32> to vector<2x8x32xf32>
    %37 = arith.mulf %21, %36 : vector<2x8x32xf32>
    %cst_26 = arith.constant dense<0.000000e+00> : vector<2x8xf32>
    %38 = vector.multi_reduction <add>, %37, %cst_26 [2] : vector<2x8x32xf32> to vector<2x8xf32>
    %39 = vector.shape_cast %38 : vector<2x8xf32> to vector<2x8x1xf32>
    %40 = vector.broadcast %29 : vector<1x1x1xf32> to vector<2x8x1xf32>
    %41 = arith.addf %39, %40 : vector<2x8x1xf32>
    %cst_27 = arith.constant dense<0xFF800000> : vector<2x1xf32>
    %42 = vector.multi_reduction <maximumf>, %35, %cst_27 [1] : vector<2x16x1xf32> to vector<2x1xf32>
    %43 = vector.shape_cast %42 : vector<2x1xf32> to vector<2x1x1xf32>
    %44 = vector.broadcast %43 : vector<2x1x1xf32> to vector<2x16x1xf32>
    %45 = arith.subf %35, %44 : vector<2x16x1xf32>
    %46 = math.exp %45 : vector<2x16x1xf32>
    %cst_28 = arith.constant dense<0.000000e+00> : vector<2x1xf32>
    %47 = vector.multi_reduction <add>, %46, %cst_28 [1] : vector<2x16x1xf32> to vector<2x1xf32>
    %48 = vector.shape_cast %47 : vector<2x1xf32> to vector<2x1x1xf32>
    %49 = tpu.reciprocal %48 : vector<2x1x1xf32> -> vector<2x1x1xf32>
    %50 = vector.broadcast %49 : vector<2x1x1xf32> to vector<2x16x1xf32>
    %51 = arith.mulf %46, %50 : vector<2x16x1xf32>
    %cst_29 = arith.constant dense<0xFF800000> : vector<2x1xf32>
    %52 = vector.multi_reduction <maximumf>, %41, %cst_29 [1] : vector<2x8x1xf32> to vector<2x1xf32>
    %53 = vector.shape_cast %52 : vector<2x1xf32> to vector<2x1x1xf32>
    %54 = vector.broadcast %53 : vector<2x1x1xf32> to vector<2x8x1xf32>
    %55 = arith.subf %41, %54 : vector<2x8x1xf32>
    %56 = math.exp %55 : vector<2x8x1xf32>
    %cst_30 = arith.constant dense<0.000000e+00> : vector<2x1xf32>
    %57 = vector.multi_reduction <add>, %56, %cst_30 [1] : vector<2x8x1xf32> to vector<2x1xf32>
    %58 = vector.shape_cast %57 : vector<2x1xf32> to vector<2x1x1xf32>
    %59 = tpu.reciprocal %58 : vector<2x1x1xf32> -> vector<2x1x1xf32>
    %60 = vector.broadcast %59 : vector<2x1x1xf32> to vector<2x8x1xf32>
    %61 = arith.mulf %56, %60 : vector<2x8x1xf32>
    %62 = vector.broadcast %51 : vector<2x16x1xf32> to vector<2x16x32xf32>
    %63 = arith.mulf %62, %0 : vector<2x16x32xf32>
    %cst_31 = arith.constant dense<0.000000e+00> : vector<2x32xf32>
    %64 = vector.multi_reduction <add>, %63, %cst_31 [1] : vector<2x16x32xf32> to vector<2x32xf32>
    %c0_32 = arith.constant 0 : index
    %c0_33 = arith.constant 0 : index
    %c0_34 = arith.constant 0 : index
    %65 = vector.load %arg12[%c0_32, %c0_33, %c0_34] : memref<1x2x32xf32, #tpu.memory_space<vmem>>, vector<1x2x32xf32>
    %66 = vector.shape_cast %65 : vector<1x2x32xf32> to vector<2x32xf32>
    %67 = vector.shape_cast %64 : vector<2x32xf32> to vector<1x2x32xf32>
    tpu.vector_store %arg12[%c0_32, %c0_33, %c0_34], %67 {strides = array<i32>} : memref<1x2x32xf32, #tpu.memory_space<vmem>>, vector<1x2x32xf32>,
    %68 = vector.broadcast %61 : vector<2x8x1xf32> to vector<2x8x32xf32>
    %69 = arith.mulf %68, %2 : vector<2x8x32xf32>
    %cst_35 = arith.constant dense<0.000000e+00> : vector<2x32xf32>
    %70 = vector.multi_reduction <add>, %69, %cst_35 [1] : vector<2x8x32xf32> to vector<2x32xf32>
    %c0_36 = arith.constant 0 : index
    %c0_37 = arith.constant 0 : index
    %c0_38 = arith.constant 0 : index
    %71 = vector.load %arg13[%c0_36, %c0_37, %c0_38] : memref<1x2x32xf32, #tpu.memory_space<vmem>>, vector<1x2x32xf32>
    %72 = vector.shape_cast %71 : vector<1x2x32xf32> to vector<2x32xf32>
    %73 = vector.shape_cast %70 : vector<2x32xf32> to vector<1x2x32xf32>
    tpu.vector_store %arg13[%c0_36, %c0_37, %c0_38], %73 {strides = array<i32>} : memref<1x2x32xf32, #tpu.memory_space<vmem>>, vector<1x2x32xf32>,
    return
  }
  func.func @transform_0(%arg0: i32, %arg1: i32) -> (i32, i32, i32) {
    %c0_i32 = arith.constant 0 : i32
    %c0_i32_0 = arith.constant 0 : i32
    %c0_i32_1 = arith.constant 0 : i32
    return %arg0, %c0_i32, %c0_i32_0 : i32, i32, i32
  }
  func.func @transform_1(%arg0: i32, %arg1: i32) -> (i32, i32, i32, i32) {
    %c0_i32 = arith.constant 0 : i32
    %c0_i32_0 = arith.constant 0 : i32
    %c0_i32_1 = arith.constant 0 : i32
    return %arg1, %arg0, %c0_i32, %c0_i32_0 : i32, i32, i32, i32
  }
  func.func @transform_2(%arg0: i32, %arg1: i32) -> (i32, i32) {
    %c0_i32 = arith.constant 0 : i32
    %c0_i32_0 = arith.constant 0 : i32
    %c0_i32_1 = arith.constant 0 : i32
    return %c0_i32, %c0_i32_0 : i32, i32
  }
  func.func @transform_3(%arg0: i32, %arg1: i32) -> (i32, i32) {
    %c0_i32 = arith.constant 0 : i32
    %c0_i32_0 = arith.constant 0 : i32
    %c0_i32_1 = arith.constant 0 : i32
    return %c0_i32, %c0_i32_0 : i32, i32
  }
  func.func @transform_4(%arg0: i32, %arg1: i32) -> (i32, i32) {
    %c0_i32 = arith.constant 0 : i32
    %c0_i32_0 = arith.constant 0 : i32
    %c0_i32_1 = arith.constant 0 : i32
    return %c0_i32, %c0_i32_0 : i32, i32
  }
  func.func @transform_5(%arg0: i32, %arg1: i32) -> (i32, i32) {
    %c0_i32 = arith.constant 0 : i32
    %c0_i32_0 = arith.constant 0 : i32
    %c0_i32_1 = arith.constant 0 : i32
    return %c0_i32, %c0_i32_0 : i32, i32
  }
  func.func @transform_6(%arg0: i32, %arg1: i32) -> (i32, i32) {
    %c0_i32 = arith.constant 0 : i32
    %c0_i32_0 = arith.constant 0 : i32
    %c0_i32_1 = arith.constant 0 : i32
    return %c0_i32, %c0_i32_0 : i32, i32
  }
  func.func @transform_7(%arg0: i32, %arg1: i32) -> (i32, i32) {
    %c0_i32 = arith.constant 0 : i32
    %c0_i32_0 = arith.constant 0 : i32
    %c0_i32_1 = arith.constant 0 : i32
    return %c0_i32, %c0_i32_0 : i32, i32
  }
  func.func @transform_8(%arg0: i32, %arg1: i32) -> (i32, i32) {
    %c0_i32 = arith.constant 0 : i32
    %c0_i32_0 = arith.constant 0 : i32
    %c0_i32_1 = arith.constant 0 : i32
    return %c0_i32, %c0_i32_0 : i32, i32
  }
  func.func @transform_9(%arg0: i32, %arg1: i32) -> (i32, i32) {
    %c0_i32 = arith.constant 0 : i32
    %c0_i32_0 = arith.constant 0 : i32
    %c0_i32_1 = arith.constant 0 : i32
    return %c0_i32, %c0_i32_0 : i32, i32
  }
  func.func @transform_10(%arg0: i32, %arg1: i32) -> (i32, i32, i32) {
    %c0_i32 = arith.constant 0 : i32
    %c0_i32_0 = arith.constant 0 : i32
    return %arg1, %arg0, %c0_i32 : i32, i32, i32
  }
  func.func @transform_11(%arg0: i32, %arg1: i32) -> (i32, i32, i32) {
    %c0_i32 = arith.constant 0 : i32
    %c0_i32_0 = arith.constant 0 : i32
    return %arg1, %arg0, %c0_i32 : i32, i32, i32
  }
}

</mosaic_0001>

<bundles_post_ra>
// kernel: tpu_custom_call.1
= control target key start
LH: loop header
LB: loop body
LE: loop exit
PB: predicated region body
PF: predicated region fallthrough
CT: control target
= control target key end

     0   :  { %s2140_s0 = inlined_call_operand.hbm [shape: f32[2,16,32], index: 0, kind: input, shape index: {}]   ;;  %s2141_s1 = inlined_call_operand.hbm [shape: f32[3,2,8,32], index: 1, kind: input, shape index: {}]   ;;  %s2142_s2 = inlined_call_operand.hbm [shape: f32[32,32], index: 2, kind: input, shape index: {}]   ;;  %s2143_s3 = inlined_call_operand.vmem [shape: f32[1,32], index: 3, kind: input, shape index: {}]   ;;  %s2144_s4 = inlined_call_operand.hbm [shape: f32[32,32], index: 4, kind: input, shape index: {}]   ;;  %s2145_s5 = inlined_call_operand.vmem [shape: f32[1,32], index: 5, kind: input, shape index: {}]   ;;  %s2146_s6 = inlined_call_operand.vmem [shape: f32[1,32], index: 6, kind: input, shape index: {}]   ;;  %s2147_s7 = inlined_call_operand.<no memory space> [shape: f32[1,1], index: 7, kind: input, shape index: {}]   ;;  %s2148_s8 = inlined_call_operand.vmem [shape: f32[1,32], index: 8, kind: input, shape index: {}]   ;;  %s2149_s10 = inlined_call_operand.hbm [shape: f32[3,2,32], index: 10, kind: output, shape index: {0}]   ;;  %s2150_s11 = inlined_call_operand.hbm [shape: f32[3,2,32], index: 11, kind: output, shape index: {1}]   ;;  %s2151_s9 = inlined_call_operand.<no memory space> [shape: f32[1,1], index: 9, kind: input, shape index: {}]  }
   0x1   :  { %2159 = sst [smem:[#allocation26_spill]] %s2140_s0  ;;  %v17_v0 = vstv %s2147_s7  ;;  %v19_v1 = vstv %s2151_s9 }
   0x2   :  { %2160 = sst [smem:[#allocation27_spill]] %s2142_s2  ;;  %18 = vst [vmem:[#allocation3] sm:$0x1] %v17_v0 }
   0x3   :  { %2161 = sst [smem:[#allocation28_spill]] %s2144_s4  ;;  %20 = vst [vmem:[#allocation4] sm:$0x1] %v19_v1 }
   0x4   :  { %21 = vsyncpa [#allocation6], 0 }
   0x5   :  { %22 = vsyncpa [#allocation9], 0 }
   0x6   :  { %24 = vsyncpa [#allocation9 + $0x1], 0 }
   0x7   :  { %25 = vsyncpa [#allocation12], 0 }
   0x8   :  { %26 = vsyncpa [#allocation7], 0 }
   0x9   :  { %28 = vsyncpa [#allocation7 + $0x1], 0 }
   0xa   :  { %29 = vsyncpa [#allocation15], 0 }
   0xb   :  { %31 = vsyncpa [#allocation15 + $0x1], 0  ;;  %s1824_s21 = smov 0   ;;  %s1826_s22 = smov 0  }
   0xc   :  { %s1828_s23 = smov 0   ;;  %s1830_s7 = smov 0  }
   0xd   :  { %s1832_s24 = smov 0   ;;  %s1834_s9 = smov 0  }
   0xe LB: > { %2162 = sst [smem:[#allocation22_spill]] %s1730_s21  ;;  %s1855_s25 = sadd.s32 4294967295, %s1750_s9   ;;  %s1750_s9 = sphi %s1834_s9, %s37_s9   ;;  %s1746_s24 = sphi %s1832_s24, %s2185_s24   ;;  %s1742_s7 = sphi %s1830_s7, %s2184_s7   ;;  %s1738_s23 = sphi %s1828_s23, %s2183_s23   ;;  %s1734_s22 = sphi %s1826_s22, %s2182_s22   ;;  %s1730_s21 = sphi %s1824_s21, %s2181_s21  }
   0xf   : > { %s1303_s26 = sadd.s32 4294967294, %s1750_s9   ;;  %p97_p0 = scmp.ne.s32.totalorder %s1734_s22, %s1730_s21 }
  0x10   : > { %p98_p1 = scmp.eq.s32.totalorder %s1855_s25, 0  ;;  %p291_p2 = scmp.eq.s32.totalorder %s1855_s25, 2 }
  0x11   : > { %p297_p3 = scmp.eq.s32.totalorder %s1303_s26, 2  ;;  %p1304_p5 = scmp.ge.s32.totalorder %s1750_s9, 1 }
  0x12   : > { %p1864_p4 = por %p98_p1, %p97_p0  ;;  %p332_p7 = scmp.lt.s32.totalorder %s1750_s9, 4 }
  0x13   : > { %p1869_p6 = por %p297_p3, %p97_p0  ;;  %s2167_s2 = sld [smem:[#allocation27_spill]] }
  0x14   : > { %p1874_p8 = pnand %p1304_p5, %p332_p7  ;;  %s1752_s14 = smov [#allocation10]  }
  0x15   : > { %s2164_s28 = scalar_select %p1869_p6, 1, 0 }
  0x16   : > { %p1375_p9 = pneg %p1874_p8  ;;  %s363_s15 = sshll.u32 %s1752_s14, 4  ;;  %s364_s15 = int_to_ptr.vmem [resolvable:$true] %s363_s15 }
  0x17   : > { %2165 = sst [smem:[#allocation23_spill]] %s2164_s28  ;;  %s2152_s20 = smov 128  }
  0x18   : > { %p1885_p10 = pnand %p1375_p9, %p98_p1  ;;  %s2169_s0 = sld [smem:[#allocation26_spill]] }
  0x19   : > { %s361_s13 = sshll.u32 %s2167_s2, 4  ;;  %s2153_s26 = smov 8   ;;  %s362_s13 = int_to_ptr.hbm [resolvable:$true] %s361_s13 }
  0x1a   : > { %1381 = dma.hbm_to_vmem [thread:$0]  (!%p1885_p10), %s362_s13, 512, %s364_s15, [#allocation9], %s2152_s20, %s2152_s20, %s2153_s26  }
  0x1b   : > { %s1755_s30 = smov [#allocation5]   ;;  %s2170_s4 = sld [smem:[#allocation28_spill]] }
  0x1c   : > { %s349_s12 = sshll.u32 %s1755_s30, 4  ;;  %s1756_s13 = smov [#allocation11]   ;;  %s350_s12 = int_to_ptr.vmem [resolvable:$true] %s349_s12 }
  0x1d   : > { %s380_s15 = sshll.u32 %s1756_s13, 4  ;;  %s46_s2 = sadd.s32 1, %s1746_s24  ;;  %s381_s15 = int_to_ptr.vmem [resolvable:$true] %s380_s15 }
  0x1e   : > { %s347_s19 = sshll.u32 %s2169_s0, 4  ;;  %p47_p11 = scmp.ge.s32.totalorder %s46_s2, 3  ;;  %s348_s19 = int_to_ptr.hbm [resolvable:$true] %s347_s19 }
  0x1f   : > { %1378 = dma.hbm_to_vmem [thread:$0]  (!%p1885_p10), %s348_s19, 512, %s350_s12, [#allocation6], %s2152_s20, %s2152_s20, %s2153_s26  }
  0x20   : > { %p91_p12 = scmp.ne.s32.totalorder %s1738_s23, %s1734_s22  ;;  %p92_p13 = scmp.eq.s32.totalorder %s1750_s9, 0 }
  0x21   : > { %s378_s17 = sshll.u32 %s2170_s4, 4  ;;  %s2187_s2 = smov (%p47_p11, %s46_s2), 0  ;;  %s379_s17 = int_to_ptr.hbm [resolvable:$true] %s378_s17 }
  0x22   : > { %1384 = dma.hbm_to_vmem [thread:$0]  (!%p1885_p10), %s379_s17, 512, %s381_s15, [#allocation12], %s2152_s20, %s2152_s20, %s2153_s26  }
  0x23   : > { %2171 = sst [smem:[#allocation24_spill]] %s2187_s2  ;;  %s84_s18 = sadd.s32 1, %s1738_s23 }
  0x24   : > { %p1919_p0 = por %p291_p2, %p91_p12  ;;  %s79_s30 = ssub.s32 %s1746_s24, %s2187_s2 }
  0x25   : > { %p1925_p3 = por %p92_p13, %p91_p12  ;;  %p82_p5 = scmp.eq.s32.totalorder %s79_s30, 0 }
  0x26   : > { %s2172_s19 = scalar_select %p1919_p0, 1, 0 }
  0x27   : > { %p1399_p7 = scmp.lt.s32.totalorder %s1750_s9, 3  ;;  %s409_s12 = sand.u32 1, %s1750_s9  }
  0x28   : > { %2173 = sst [smem:[#allocation25_spill]] %s2172_s19  ;;  %s411_s14 = sand.u32 1, %s1738_s23  }
  0x29   : > { %s1933_s17 = scalar_select %p82_p5, %s1738_s23, %s84_s18  }
  0x2a   : > { %s1309_s13 = sshll.u32 %s411_s14, 4  ;;  %s1344_s15 = sshll.u32 %s1746_s24, 4 }
  0x2b   : > { %s420_s0 = scalar_lea.hbm %s2141_s1, %s1344_s15  ;;  %s413_s28 = scalar_lea.vmem [#allocation8], %s1309_s13 }
  0x2c   : > { %s421_s4 = sshll.u32 %s420_s0, 4  ;;  %s423_s2 = sshll.u32 %s413_s28, 4  ;;  %s422_s4 = int_to_ptr.hbm [resolvable:$true] %s421_s4  ;;  %s424_s2 = int_to_ptr.vmem [resolvable:$true] %s423_s2 }
  0x2d   : > { %p1386_p2 = pnand %p1399_p7, %p1925_p3  ;;  %s410_s21 = scalar_lea.sflag [#allocation9], %s409_s12 }
  0x2e   : > { %s2175_s30 = smov 8   ;;  %s2176_s19 = smov 128  }
  0x2f   : > { %1388 = dma.hbm_to_vmem [thread:$0]  (!%p1386_p2), %s422_s4, 256, %s424_s2, %s410_s21, %s2176_s19, %s2176_s19, %s2175_s30  }
  0x30   : > { %435 = sbr.rel (%p1874_p8) target bundleno = 999 (0x3e7), region = 60 }
  0x35   : > { %1705 = dma.done.wait (%p98_p1), [#allocation6], 512  }
  0x36   : > { %1707 = vsyncadd (%p98_p1), [#allocation6], 4294966784  ;;  %s442_s0 = sand.u32 1, %s1855_s25   ;;  %s1952_s28 = sand.u32 1, %s1734_s22  }
  0x37   : > { %s1314_s20 = sshll.u32 %s1952_s28, 4  ;;  %s443_s26 = scalar_lea.sflag [#allocation9], %s442_s0 }
  0x38   : > { %s446_s18 = scalar_lea.vmem [#allocation8], %s1314_s20 }
  0x39   : > { %1709 = dma.done.wait (%p1864_p4), %s443_s26, 256  }
  0x3a   : > { %1711 = vsyncadd (%p1864_p4), %s443_s26, 4294967040 }
  0x3b   : > { %1713 = dma.done.wait (%p98_p1), [#allocation9], 512  }
  0x3c   : > { %1715 = vsyncadd (%p98_p1), [#allocation9], 4294966784 }
  0x3d   : > { %1717 = dma.done.wait (%p98_p1), [#allocation12], 512  }
  0x3e   : > { %1719 = vsyncadd (%p98_p1), [#allocation12], 4294966784  ;;  %s1317_s4 = sshll.u32 %s1952_s28, 1  ;;  %v1968_v2 = vld [vmem:[#allocation5] sm:$0xff]  ;;  %v1970_v3 = vld [vmem:[#allocation5 + $0x8] sm:$0xff]  ;;  %p1319_p1 = scmp.ne.s32.totalorder %s1742_s7, 0 }
  0x3f   : > { %v1972_v4 = vld [vmem:[#allocation5 + $0x10] sm:$0xff]  ;;  %v1974_v5 = vld [vmem:[#allocation5 + $0x18] sm:$0xff]  ;;  %s1980_s21 = scalar_lea.vmem [#allocation13], %s1317_s4  ;;  %s1982_s27 = scalar_lea.vmem [#allocation14], %s1317_s4 }
  0x40   : > { %v1976_v6 = vld [vmem:[%s446_s18] sm:$0xff]  ;;  %v1978_v7 = vld [vmem:[%s446_s18 + $0x8] sm:$0xff]  ;;  %512 = sbr.rel (%p1319_p1) target bundleno = 213 (0xd5), region = 80 }
  0x45   : > { %v516_v8 = vld [vmem:[#allocation10 + $0x18] sm:$0xff]  ;;  %v515_v9 = vld [vmem:[#allocation10 + $0x10] sm:$0xff]  ;;  %v514_v10 = vld [vmem:[#allocation10 + $0x8] sm:$0xff]  ;;  %vm521_vm0 = vcmask 261120  }
  0x46   : > { %1346 = vmatpush.msra.mxu2 %v516_v8  ;;  %1347 = vmatpush.msra.mxu3 %v516_v8  ;;  %v513_v11 = vld [vmem:[#allocation10] sm:$0xff]  ;;  %v1459_v12 = vld [vmem:[%s2143_s3] ss:$0 sm:$0xff] }
  0x47   : > { %546 = vmatpush.msra.mxu0 %v516_v8  ;;  %1345 = vmatpush.msra.mxu1 %v516_v8 }
  0x48   : > { %1349 = vmatpush.msra.mxu2 %v515_v9  ;;  %1350 = vmatpush.msra.mxu3 %v515_v9 }
  0x49   : > { %547 = vmatpush.msra.mxu0 %v515_v9  ;;  %1348 = vmatpush.msra.mxu1 %v515_v9 }
  0x4a   : > { %1352 = vmatpush.msra.mxu2 %v514_v10  ;;  %1353 = vmatpush.msra.mxu3 %v514_v10 }
  0x4b   : > { %548 = vmatpush.msra.mxu0 %v514_v10  ;;  %1351 = vmatpush.msra.mxu1 %v514_v10 }
  0x4c   : > { %1355 = vmatpush.msra.mxu2 %v513_v11  ;;  %1356 = vmatpush.msra.mxu3 %v513_v11 }
  0x4d   : > { %1322 = vmatmul.msk.f32.vlgmr.msra.gmra.mxu2 %vm521_vm0, %v1972_v4  ;;  %1323 = vmatmul.msk.f32.vlgmr.msra.gmra.mxu3 %vm521_vm0, %v1974_v5 }
  0x4e   : > { %549 = vmatpush.msra.mxu0 %v513_v11  ;;  %1354 = vmatpush.msra.mxu1 %v513_v11 }
  0x4f   : > { %1320 = vmatmul.msk.f32.vlgmr.msra.gmra.mxu0 %vm521_vm0, %v1968_v2  ;;  %1321 = vmatmul.msk.f32.vlgmr.msra.gmra.mxu1 %vm521_vm0, %v1970_v3 }
  0xcc   : > { %v551_v13 = vpop.f32.mrf.mxu0  ;;  %v554_v14 = vpop.f32.mrf.mxu1 }
  0xcd   : > { %v552_v15 = vadd.f32 %v1459_v12, %v551_v13  ;;  %v555_v16 = vadd.f32 %v1459_v12, %v554_v14 }
  0xcf   : > { %563 = vst.msk [vmem:[#allocation2] sm:$0xff] %vm521_vm0, %v552_v15 }
  0xd0   : > { %564 = vst.msk [vmem:[#allocation2 + $0x8] sm:$0xff] %vm521_vm0, %v555_v16  ;;  %v557_v17 = vpop.f32.mrf.mxu2  ;;  %v560_v18 = vpop.f32.mrf.mxu3 }
  0xd1   : > { %v558_v19 = vadd.f32 %v1459_v12, %v557_v17  ;;  %v561_v20 = vadd.f32 %v1459_v12, %v560_v18 }
  0xd3   : > { %565 = vst.msk [vmem:[#allocation2 + $0x10] sm:$0xff] %vm521_vm0, %v558_v19 }
  0xd4   : > { %566 = vst.msk [vmem:[#allocation2 + $0x18] sm:$0xff] %vm521_vm0, %v561_v20 }
  0xd5 PF: > { %vm579_vm1 = vcmask 261120   ;;  %v574_v21 = vld [vmem:[#allocation11 + $0x18] sm:$0xff]  ;;  %v573_v23 = vld [vmem:[#allocation11 + $0x10] sm:$0xff]  ;;  %v572_v25 = vld [vmem:[#allocation11 + $0x8] sm:$0xff]  ;;  %vm794_vm2 = vcmask 130048   ;;  %vm695_vm3 = vcmask 64512  }
  0xd6   : > { %1326 = vmatpush.xpose.msk.msra.mxu1 %vm579_vm1, %v1970_v3  ;;  %1329 = vmatpush.xpose.msk.msra.mxu2 %vm579_vm1, %v1974_v5  ;;  %v567_v24 = vld [vmem:[#allocation2] sm:$0xff]  ;;  %vm891_vm4 = vcmask 7168   ;;  %s1340_s15 = sshll.u32 %s1742_s7, 1  ;;  %s1135_s26 = sshll.u32 %s1980_s21, 4  ;;  %s1136_s26 = int_to_ptr.vmem [resolvable:$true] %s1135_s26 }
  0xd7   : > { %v568_v22 = vld [vmem:[#allocation2 + $0x8] sm:$0xff]  ;;  %598 = vmatpush.msra.mxu0 %v574_v21  ;;  %v1463_v31 = vld [vmem:[%s2145_s5] ss:$0 sm:$0xff]  ;;  %s1133_s20 = scalar_lea.hbm %s2149_s10, %s1340_s15  ;;  %s1148_s29 = scalar_lea.hbm %s2150_s11, %s1340_s15 }
  0xd8   : > { %v571_v26 = vld [vmem:[#allocation11] sm:$0xff]  ;;  %v1464_v44 = vld [vmem:[%s2146_s6] ss:$0 sm:$0xff]  ;;  %s1137_s7 = sshll.u32 %s1133_s20, 4  ;;  %s1150_s2 = sshll.u32 %s1982_s27, 4  ;;  %s1138_s7 = int_to_ptr.hbm [resolvable:$true] %s1137_s7  ;;  %s1151_s2 = int_to_ptr.vmem [resolvable:$true] %s1150_s2 }
  0xd9   : > { %599 = vmatpush.msra.mxu0 %v573_v23  ;;  %v1465_v62 = vld [vmem:[%s2148_s8] ss:$0 sm:$0xff]  ;;  %s1152_s19 = sshll.u32 %s1148_s29, 4  ;;  %s1117_s16 = scalar_lea.sflag [#allocation7], %s1952_s28  ;;  %s1153_s19 = int_to_ptr.hbm [resolvable:$true] %s1152_s19 }
  0xda   : > { %1327 = vmatpush.xpose.msk.msra.mxu1 %vm579_vm1, %v1968_v2  ;;  %1330 = vmatpush.xpose.msk.msra.mxu2 %vm579_vm1, %v1972_v4  ;;  %v569_v37 = vld [vmem:[#allocation2 + $0x10] sm:$0xff]  ;;  %v1466_v17 = vld [vmem:[#allocation3] ss:$0 sm:$0xff]  ;;  %s1638_s12 = sshra.s32 %s1138_s7, 4  ;;  %s1644_s30 = scalar_lea.hbm %s2149_s10, 6  ;;  %s1639_s12 = int_to_ptr.hbm [resolvable:$true] %s1638_s12 }
  0xdb   : > { %600 = vmatpush.msra.mxu0 %v572_v25  ;;  %v570_v35 = vld [vmem:[#allocation2 + $0x18] sm:$0xff]  ;;  %v1467_v25 = vld [vmem:[#allocation4] ss:$0 sm:$0xff]  ;;  %s1640_s14 = scalar_lea.hbm %s1639_s12, 2  ;;  %p1645_p10 = scmp.lt.s32.totalorder %s1639_s12, %s2149_s10 }
  0xdc   : > { %p1641_p4 = scmp.ne.s32.totalorder %s1639_s12, %s1640_s14  ;;  %p1646_p11 = scmp.lt.s32.totalorder %s1644_s30, %s1640_s14 }
  0xdd   : > { %1328 = vmatmul.msk.f32.vlgmr.msra.gmra.mxu1 %vm579_vm1, %v1976_v6  ;;  %1331 = vmatmul.msk.f32.vlgmr.msra.gmra.mxu2 %vm579_vm1, %v1978_v7 }
  0xde   : > { %812 = vmatpush.msrb.mxu2 %v568_v22  ;;  %601 = vmatpush.msra.mxu0 %v571_v26  ;;  %p1642_p8 = pnand %p1641_p4, %p1919_p0  ;;  %p1647_p12 = por %p1646_p11, %p1645_p10 }
  0xdf   : > { %1324 = vmatmul.msk.f32.vlgmr.msra.gmra.mxu0 %vm579_vm1, %v1976_v6 }
  0xe0   : > { %813 = vmatpush.msrb.mxu2 %v567_v24  ;;  %p1643_p9 = pneg %p1642_p8 }
  0xe2   : > { %p1648_p13 = pnand %p1647_p12, %p1643_p9 }
  0xe7   : > { %1325 = vmatmul.msk.f32.gmra.mxu0 %vm579_vm1, %v1978_v7 }
 0x15a   : > { %v632_v27 = vpop.f32.mrf.mxu1 }
 0x15b   : > { %1468 = vtanh.f32 %v632_v27 }
 0x15c   : > { %v603_v32 = vpop.f32.mrf.mxu0 }
 0x15d   : > { %v604_v33 = vadd.f32 %v1463_v31, %v603_v32 }
 0x15f   : > { %717 = vmatpush.msra.mxu3 %v604_v33 }
 0x160   : > { %v658_v29 = vpop.f32.mrf.mxu2 }
 0x161   : > { %v1469_v28 = vpop.eup %1468  ;;  %1470 = vtanh.f32 %v658_v29  ;;  %835 = vmatpush.msrb.mxu3 %v570_v35 }
 0x162   : > { %663 = vxpose.xlu0.b32.start.end [1/1] (short) (narrow) %v1469_v28, 16  ;;  %1336 = vmatmul.msk.f32.vlgmr.msrb.gmra.mxu2 %vm794_vm2, %v1469_v28 }
 0x163   : > { %836 = vmatpush.msrb.mxu3 %v569_v37 }
 0x164   : > { %v606_v34 = vpop.f32.mrf.mxu0 }
 0x165   : > { %v607_v36 = vadd.f32 %v1463_v31, %v606_v34 }
 0x167   : > { %v1471_v30 = vpop.eup %1470  ;;  %778 = vmatpush.msrb.mxu1 %v607_v36 }
 0x172   : > { %725 = vxpose.xlu0.b32.start.end [1/1] (short) (narrow) %v1471_v30, 16 }
 0x1e5   : > { %v815_v45 = vpop.f32.mrf.mxu2 }
 0x1e6   : > { %v841_v51 = vadd.f32 %v815_v45, %v604_v33 }
 0x206   : > { %v679_v38 = vpop.trf.xlu0 }
 0x207   : > { %1332 = vmatmul.msk.f32.vlgmr.msra.gmra.mxu3 %vm695_vm3, %v679_v38 }
 0x20e   : > { %v680_v39 = vpop.trf.xlu0 }
 0x20f   : > { %1333 = vmatmul.msk.f32.gmra.mxu3 %vm695_vm3, %v680_v39 }
 0x216   : > { %v741_v40 = vpop.trf.xlu0 }
 0x217   : > { %1334 = vmatmul.msk.f32.vlgmr.msrb.gmra.mxu1 %vm695_vm3, %v741_v40  ;;  %1337 = vmatmul.msk.f32.vlgmr.msrb.gmra.mxu3 %vm794_vm2, %v1471_v30 }
 0x21e   : > { %v742_v41 = vpop.trf.xlu0 }
 0x21f   : > { %1335 = vmatmul.msk.f32.gmra.mxu1 %vm695_vm3, %v742_v41 }
 0x28a   : > { %v719_v42 = vpop.f32.mrf.mxu3 }
 0x28b   : > { %v786_v43 = vadd.f32 %v719_v42, %v567_v24 }
 0x28d   : > { %1472 = vtanh.f32 %v786_v43 }
 0x292   : > { %v722_v46 = vpop.f32.mrf.mxu3 }
 0x293   : > { %v1473_v47 = vpop.eup %1472  ;;  %v787_v48 = vadd.f32 %v722_v46, %v568_v22 }
 0x294   : > { %v780_v49 = vpop.f32.mrf.mxu1  ;;  %v852_v50 = vmul.f32 %v1473_v47, %v1464_v44 }
 0x295   : > { %1474 = vtanh.f32 %v787_v48  ;;  %v788_v52 = vadd.f32 %v780_v49, %v569_v37 }
 0x296   : > { %v856_v53 = vsel %vm579_vm1, %v852_v50, 0.0 }
 0x297   : > { %1476 = vtanh.f32 %v788_v52  ;;  %857 = vadd.xlane.f32.xlu1 %v856_v53 }
 0x298   : > { %1478 = vtanh.f32 %v841_v51 }
 0x29a   : > { %v838_v55 = vpop.f32.mrf.mxu3 }
 0x29b   : > { %v1475_v54 = vpop.eup %1474  ;;  %v842_v0 = vadd.f32 %v838_v55, %v607_v36 }
 0x29c   : > { %v783_v56 = vpop.f32.mrf.mxu1  ;;  %v853_v57 = vmul.f32 %v1475_v54, %v1464_v44 }
 0x29d   : > { %v1477_v58 = vpop.eup %1476  ;;  %v789_v59 = vadd.f32 %v783_v56, %v570_v35 }
 0x29e   : > { %v859_v60 = vsel %vm579_vm1, %v853_v57, 0.0  ;;  %v854_v61 = vmul.f32 %v1477_v58, %v1464_v44  ;;  %v1479_v63 = vpop.eup %1478 }
 0x29f   : > { %1480 = vtanh.f32 %v789_v59  ;;  %860 = vadd.xlane.f32.xlu1 %v859_v60  ;;  %v878_v8 = vmul.f32 %v1479_v63, %v1465_v62 }
 0x2a0   : > { %v862_v1 = vsel %vm579_vm1, %v854_v61, 0.0  ;;  %1482 = vtanh.f32 %v842_v0 }
 0x2a1   : > { %863 = vadd.xlane.f32.xlu2 %v862_v1  ;;  %v880_v10 = vsel %vm579_vm1, %v878_v8, 0.0  ;;  %v1757_v1 = vmov 0  }
 0x2a2   : > { %1461 = vset.pattern.permute.xlu1 %v1757_v1  ;;  %1460 = vset.pattern.permute.xlu0 %v1757_v1 }
 0x2a3   : > { %1462 = vset.pattern.permute.xlu2 %v1757_v1 }
 0x2a5   : > { %v1481_v9 = vpop.eup %1480 }
 0x2a6   : > { %v855_v11 = vmul.f32 %v1481_v9, %v1464_v44  ;;  %v1483_v13 = vpop.eup %1482 }
 0x2a7   : > { %881 = vadd.xlane.f32.xlu1 %v880_v10  ;;  %v879_v14 = vmul.f32 %v1483_v13, %v1465_v62 }
 0x2a8   : > { %v865_v12 = vsel %vm579_vm1, %v855_v11, 0.0 }
 0x2a9   : > { %866 = vadd.xlane.f32.xlu2 %v865_v12  ;;  %v883_v15 = vsel %vm579_vm1, %v879_v14, 0.0 }
 0x2b1   : > { %884 = vadd.xlane.f32.xlu2 %v883_v15 }
 0x30a   : > { %v858_v16 = vpop.xlane.xlu1 %857 }
 0x30b   : > { %v871_v18 = vadd.f32 %v1466_v17, %v858_v16 }
 0x30d   : > { %v892_v22 = vsel %vm891_vm4, %v871_v18, -inf }
 0x312   : > { %v861_v19 = vpop.xlane.xlu1 %860 }
 0x313   : > { %v872_v20 = vadd.f32 %v1466_v17, %v861_v19 }
 0x314   : > { %v864_v21 = vpop.xlane.xlu2 %863 }
 0x315   : > { %v893_v23 = vsel %vm891_vm4, %v872_v20, -inf  ;;  %v873_v29 = vadd.f32 %v1466_v17, %v864_v21 }
 0x316   : > { %v894_v24 = vmax.f32 %v892_v22, %v893_v23 }
 0x317   : > { %v901_v37 = vsel %vm891_vm4, %v873_v29, -inf }
 0x318   : > { %v895_v26 = vrot.slane %v894_v24, 4 }
 0x31a   : > { %v896_v27 = vmax.f32 %v894_v24, %v895_v26  ;;  %v882_v28 = vpop.xlane.xlu1 %881 }
 0x31b   : > { %v889_v30 = vadd.f32 %v1467_v25, %v882_v28 }
 0x31c   : > { %v897_v31 = vrot.slane %v896_v27, 2  ;;  %v867_v32 = vpop.xlane.xlu2 %866 }
 0x31d   : > { %v972_v33 = vsel %vm891_vm4, %v889_v30, -inf  ;;  %v874_v34 = vadd.f32 %v1466_v17, %v867_v32 }
 0x31e   : > { %v898_v35 = vmax.f32 %v896_v27, %v897_v31  ;;  %v973_v36 = vrot.slane %v972_v33, 4 }
 0x31f   : > { %v902_v38 = vsel %vm891_vm4, %v874_v34, -inf }
 0x320   : > { %v899_v39 = vrot.slane %v898_v35, 1  ;;  %v974_v40 = vmax.f32 %v972_v33, %v973_v36  ;;  %v903_v41 = vmax.f32 %v901_v37, %v902_v38 }
 0x322   : > { %v900_v42 = vmax.f32 %v898_v35, %v899_v39  ;;  %v975_v43 = vrot.slane %v974_v40, 2  ;;  %v904_v44 = vrot.slane %v903_v41, 4 }
 0x324   : > { %v910_v45 = vsub.f32 %v871_v18, %v900_v42  ;;  %v911_v46 = vsub.f32 %v872_v20, %v900_v42  ;;  %v976_v47 = vmax.f32 %v974_v40, %v975_v43  ;;  %v905_v48 = vmax.f32 %v903_v41, %v904_v44  ;;  %v885_v49 = vpop.xlane.xlu2 %884 }
 0x325   : > { %v890_v50 = vadd.f32 %v1467_v25, %v885_v49 }
 0x326   : > { %v914_v51 = vmul.f32 1.442695, %v910_v45  ;;  %v916_v52 = vmul.f32 1.442695, %v911_v46  ;;  %v977_v53 = vrot.slane %v976_v47, 1  ;;  %v906_v54 = vrot.slane %v905_v48, 2 }
 0x327   : > { %v979_v55 = vsel %vm891_vm4, %v890_v50, -inf }
 0x328   : > { %1484 = vpow2.f32 %v914_v51  ;;  %v978_v56 = vmax.f32 %v976_v47, %v977_v53  ;;  %v907_v57 = vmax.f32 %v905_v48, %v906_v54  ;;  %v980_v58 = vrot.slane %v979_v55, 4 }
 0x329   : > { %1486 = vpow2.f32 %v916_v52 }
 0x32a   : > { %v986_v59 = vsub.f32 %v889_v30, %v978_v56  ;;  %v908_v60 = vrot.slane %v907_v57, 1  ;;  %v981_v61 = vmax.f32 %v979_v55, %v980_v58 }
 0x32c   : > { %v988_v62 = vmul.f32 1.442695, %v986_v59  ;;  %v909_v63 = vmax.f32 %v907_v57, %v908_v60  ;;  %v982_v0 = vrot.slane %v981_v61, 2 }
 0x32e   : > { %v2039_v8 = vpop.eup %1484  ;;  %1488 = vpow2.f32 %v988_v62  ;;  %v912_v9 = vsub.f32 %v873_v29, %v909_v63  ;;  %v913_v10 = vsub.f32 %v874_v34, %v909_v63  ;;  %v983_v11 = vmax.f32 %v981_v61, %v982_v0 }
 0x32f   : > { %v2041_v12 = vpop.eup %1486  ;;  %v922_v13 = vsel %vm891_vm4, %v2039_v8, 0.0 }
 0x330   : > { %v923_v14 = vsel %vm891_vm4, %v2041_v12, 0.0  ;;  %v918_v15 = vmul.f32 1.442695, %v912_v9  ;;  %v920_v16 = vmul.f32 1.442695, %v913_v10  ;;  %v984_v17 = vrot.slane %v983_v11, 1 }
 0x331   : > { %v924_v18 = vadd.f32 %v923_v14, %v922_v13 }
 0x332   : > { %1490 = vpow2.f32 %v918_v15  ;;  %v985_v19 = vmax.f32 %v983_v11, %v984_v17 }
 0x333   : > { %v925_v20 = vrot.slane %v924_v18, 4  ;;  %1492 = vpow2.f32 %v920_v16 }
 0x334   : > { %v2047_v21 = vpop.eup %1488  ;;  %v987_v22 = vsub.f32 %v890_v50, %v985_v19 }
 0x335   : > { %v926_v23 = vadd.f32 %v925_v20, %v924_v18  ;;  %v992_v24 = vsel %vm891_vm4, %v2047_v21, 0.0 }
 0x336   : > { %v993_v25 = vrot.slane %v992_v24, 4  ;;  %v990_v26 = vmul.f32 1.442695, %v987_v22 }
 0x337   : > { %v927_v27 = vrot.slane %v926_v23, 2 }
 0x338   : > { %v2051_v28 = vpop.eup %1490  ;;  %v994_v29 = vadd.f32 %v993_v25, %v992_v24  ;;  %1494 = vpow2.f32 %v990_v26 }
 0x339   : > { %v2053_v30 = vpop.eup %1492  ;;  %v928_v31 = vadd.f32 %v927_v27, %v926_v23  ;;  %v931_v32 = vsel %vm891_vm4, %v2051_v28, 0.0 }
 0x33a   : > { %v995_v33 = vrot.slane %v994_v29, 2  ;;  %v932_v34 = vsel %vm891_vm4, %v2053_v30, 0.0 }
 0x33b   : > { %v929_v35 = vrot.slane %v928_v31, 1  ;;  %v933_v36 = vadd.f32 %v932_v34, %v931_v32 }
 0x33c   : > { %v996_v37 = vadd.f32 %v995_v33, %v994_v29 }
 0x33d   : > { %v930_v38 = vadd.f32 %v929_v35, %v928_v31  ;;  %v934_v39 = vrot.slane %v933_v36, 4 }
 0x33e   : > { %v2059_v40 = vpop.eup %1494  ;;  %v997_v41 = vrot.slane %v996_v37, 1 }
 0x33f   : > { %1496 = vrcp.f32 %v930_v38  ;;  %v935_v42 = vadd.f32 %v934_v39, %v933_v36  ;;  %v999_v43 = vsel %vm891_vm4, %v2059_v40, 0.0  ;;  %v951_v58 = vand.u32 2147483648, %v930_v38 }
 0x340   : > { %v998_v44 = vadd.f32 %v997_v41, %v996_v37  ;;  %v1000_v45 = vrot.slane %v999_v43, 4  ;;  %v949_v62 = vand.u32 2147483647, %v930_v38  ;;  %vm945_vm6 = vweird.f32 %v930_v38 }
 0x341   : > { %v936_v46 = vrot.slane %v935_v42, 2  ;;  %v952_v1 = vor.u32 1.1754944e-38, %v951_v58 }
 0x342   : > { %1498 = vrcp.f32 %v998_v44  ;;  %v1001_v47 = vadd.f32 %v1000_v45, %v999_v43  ;;  %vm950_vm8 = vcmp.eq.f32.partialorder %v949_v62, 8.507059e+37  ;;  %v1015_v15 = vand.u32 2147483647, %v998_v44 }
 0x343   : > { %v937_v48 = vadd.f32 %v936_v46, %v935_v42  ;;  %v1017_v16 = vand.u32 2147483648, %v998_v44  ;;  %vm1011_vm10 = vweird.f32 %v998_v44 }
 0x344   : > { %v1002_v49 = vrot.slane %v1001_v47, 2  ;;  %vm1016_vm12 = vcmp.eq.f32.partialorder %v1015_v15, 8.507059e+37 }
 0x345   : > { %v1497_v50 = vpop.eup %1496  ;;  %v938_v51 = vrot.slane %v937_v48, 1  ;;  %v1018_v24 = vor.u32 1.1754944e-38, %v1017_v16 }
 0x346   : > { %v1003_v52 = vadd.f32 %v1002_v49, %v1001_v47  ;;  %v941_v53 = vmul.f32 %v1497_v50, %v930_v38  ;;  %vm946_vm5 = vweird.f32 %v1497_v50 }
 0x347   : > { %v939_v54 = vadd.f32 %v938_v51, %v937_v48  ;;  %vm947_vm7 = vmor %vm945_vm6, %vm946_vm5  ;;  %vm1080_vm6 = vcmask 1041409  }
 0x348   : > { %v1499_v55 = vpop.eup %1498  ;;  %v1004_v56 = vrot.slane %v1003_v52, 1  ;;  %v942_v57 = vsub.f32 1.0, %v941_v53 }
 0x349   : > { %1500 = vrcp.f32 %v939_v54  ;;  %v1007_v59 = vmul.f32 %v1499_v55, %v998_v44  ;;  %vm1012_vm9 = vweird.f32 %v1499_v55  ;;  %v965_v25 = vand.u32 2147483648, %v939_v54 }
 0x34a   : > { %v1005_v60 = vadd.f32 %v1004_v56, %v1003_v52  ;;  %v943_v61 = vmul.f32 %v1497_v50, %v942_v57  ;;  %vm1013_vm11 = vmor %vm1011_vm10, %vm1012_vm9  ;;  %v963_v27 = vand.u32 2147483647, %v939_v54  ;;  %vm959_vm14 = vweird.f32 %v939_v54 }
 0x34b   : > { %v1008_v63 = vsub.f32 1.0, %v1007_v59 }
 0x34c   : > { %1502 = vrcp.f32 %v1005_v60  ;;  %v944_v0 = vadd.f32 %v1497_v50, %v943_v61  ;;  %vm964_vm0 = vcmp.eq.f32.partialorder %v963_v27, 8.507059e+37  ;;  %v1031_v39 = vand.u32 2147483648, %v1005_v60 }
 0x34d   : > { %v1009_v9 = vmul.f32 %v1499_v55, %v1008_v63  ;;  %vm1025_vm3 = vweird.f32 %v1005_v60  ;;  %v1029_v42 = vand.u32 2147483647, %v1005_v60 }
 0x34e   : > { %v948_v10 = vsel %vm947_vm7, %v1497_v50, %v944_v0 }
 0x34f   : > { %v1501_v11 = vpop.eup %1500  ;;  %v953_v13 = vsel %vm950_vm8, %v952_v1, %v948_v10  ;;  %v1010_v14 = vadd.f32 %v1499_v55, %v1009_v9  ;;  %vm1030_vm5 = vcmp.eq.f32.partialorder %v1029_v42, 8.507059e+37 }
 0x350   : > { %v969_v17 = vmul.f32 %v2041_v12, %v953_v13  ;;  %v968_v18 = vmul.f32 %v2039_v8, %v953_v13  ;;  %v955_v19 = vmul.f32 %v1501_v11, %v939_v54  ;;  %vm960_vm13 = vweird.f32 %v1501_v11 }
 0x351   : > { %v1014_v22 = vsel %vm1013_vm11, %v1499_v55, %v1010_v14  ;;  %vm961_vm15 = vmor %vm959_vm14, %vm960_vm13  ;;  %v966_v8 = vor.u32 1.1754944e-38, %v965_v25 }
 0x352   : > { %v1503_v20 = vpop.eup %1502  ;;  %1043 = vperm.xlu1 %1461, %v969_v17   ;;  %1038 = vperm.xlu0 %1460, %v968_v18   ;;  %v956_v23 = vsub.f32 1.0, %v955_v19  ;;  %v1019_v31 = vsel %vm1016_vm12, %v1018_v24, %v1014_v22 }
 0x353   : > { %v1021_v29 = vmul.f32 %v1503_v20, %v1005_v60  ;;  %v1034_v12 = vmul.f32 %v2047_v21, %v1019_v31  ;;  %vm1026_vm2 = vweird.f32 %v1503_v20  ;;  %v1032_v21 = vor.u32 1.1754944e-38, %v1031_v39 }
 0x354   : > { %v957_v26 = vmul.f32 %v1501_v11, %v956_v23  ;;  %vm1027_vm4 = vmor %vm1025_vm3, %vm1026_vm2 }
 0x355   : > { %v1022_v34 = vsub.f32 1.0, %v1021_v29 }
 0x356   : > { %v958_v32 = vadd.f32 %v1501_v11, %v957_v26 }
 0x357   : > { %v1023_v37 = vmul.f32 %v1503_v20, %v1022_v34 }
 0x358   : > { %v962_v33 = vsel %vm961_vm15, %v1501_v11, %v958_v32 }
 0x359   : > { %v967_v35 = vsel %vm964_vm0, %v966_v8, %v962_v33  ;;  %v1024_v38 = vadd.f32 %v1503_v20, %v1023_v37 }
 0x35a   : > { %1087 = vperm.xlu1 %1461, %v1034_v12   ;;  %v970_v36 = vmul.f32 %v2051_v28, %v967_v35  ;;  %v971_v41 = vmul.f32 %v2053_v30, %v967_v35 }
 0x35b   : > { %v1028_v43 = vsel %vm1027_vm4, %v1503_v20, %v1024_v38 }
 0x35c   : > { %1048 = vperm.xlu2 %1462, %v970_v36   ;;  %v1033_v44 = vsel %vm1030_vm5, %v1032_v21, %v1028_v43 }
 0x35d   : > { %v1035_v45 = vmul.f32 %v2059_v40, %v1033_v44 }
 0x364   : > { %1053 = vperm.xlu2 %1462, %v971_v41  }
 0x36c   : > { %1092 = vperm.xlu2 %1462, %v1035_v45  }
 0x3b6   : > { %v1049_v46 = vpop.permute.xlu2 %1048 }
 0x3b7   : > { %v1058_v28 = vmul.f32 %v1049_v46, %v1972_v4 }
 0x3b9   : > { %v1069_v49 = vsel %vm579_vm1, %v1058_v28, 0.0 }
 0x3be   : > { %v1054_v47 = vpop.permute.xlu2 %1053 }
 0x3bf   : > { %v1059_v48 = vmul.f32 %v1054_v47, %v1974_v5 }
 0x3c1   : > { %v1070_v30 = vsel %vm579_vm1, %v1059_v48, 0.0 }
 0x3c2   : > { %v1071_v50 = vadd.f32 %v1070_v30, %v1069_v49 }
 0x3c4   : > { %v1072_v51 = vrot.slane %v1071_v50, 4  ;;  %v1039_v52 = vpop.permute.xlu0 %1038  ;;  %v1044_v53 = vpop.permute.xlu1 %1043 }
 0x3c5   : > { %v1056_v54 = vmul.f32 %v1039_v52, %v1968_v2  ;;  %v1057_v40 = vmul.f32 %v1044_v53, %v1970_v3 }
 0x3c6   : > { %v1073_v55 = vadd.f32 %v1072_v51, %v1071_v50  ;;  %v1093_v56 = vpop.permute.xlu2 %1092 }
 0x3c7   : > { %v1060_v4 = vsel %vm579_vm1, %v1056_v54, 0.0  ;;  %v1061_v57 = vsel %vm579_vm1, %v1057_v40, 0.0  ;;  %v1096_v5 = vmul.f32 %v1093_v56, %v1978_v7 }
 0x3c8   : > { %v1074_v58 = vrot.slane %v1073_v55, 2  ;;  %v1062_v59 = vadd.f32 %v1061_v57, %v1060_v4 }
 0x3c9   : > { %v1104_v60 = vsel %vm579_vm1, %v1096_v5, 0.0 }
 0x3ca   : > { %v1063_v61 = vrot.slane %v1062_v59, 4  ;;  %v1105_v62 = vrot.slane %v1104_v60, 4  ;;  %v1075_v63 = vadd.f32 %v1074_v58, %v1073_v55 }
 0x3cc   : > { %v1064_v2 = vadd.f32 %v1063_v61, %v1062_v59  ;;  %v1106_v0 = vadd.f32 %v1105_v62, %v1104_v60  ;;  %v1088_v1 = vpop.permute.xlu1 %1087  ;;  %v1076_v7 = vrot.slane %v1075_v63, 1 }
 0x3cd   : > { %v1095_v3 = vmul.f32 %v1088_v1, %v1976_v6 }
 0x3ce   : > { %v1065_v9 = vrot.slane %v1064_v2, 2  ;;  %v1107_v10 = vrot.slane %v1106_v0, 2  ;;  %v1077_v19 = vadd.f32 %v1076_v7, %v1075_v63 }
 0x3cf   : > { %v1097_v11 = vsel %vm579_vm1, %v1095_v3, 0.0  ;;  %vm1083_vm1 = vcmask 254976  }
 0x3d0   : > { %v1066_v13 = vadd.f32 %v1065_v9, %v1064_v2  ;;  %v1098_v14 = vrot.slane %v1097_v11, 4  ;;  %v1108_v16 = vadd.f32 %v1107_v10, %v1106_v0 }
 0x3d2   : > { %v1067_v15 = vrot.slane %v1066_v13, 1  ;;  %v1099_v17 = vadd.f32 %v1098_v14, %v1097_v11  ;;  %v1109_v20 = vrot.slane %v1108_v16, 1 }
 0x3d4   : > { %v1100_v6 = vrot.slane %v1099_v17, 2  ;;  %v1068_v18 = vadd.f32 %v1067_v15, %v1066_v13 }
 0x3d6   : > { %v1101_v22 = vadd.f32 %v1100_v6, %v1099_v17  ;;  %v1081_v23 = vsel %vm1080_vm6, %v1077_v19, %v1068_v18 }
 0x3d7   : > { %1084 = vst.msk [vmem:[%s1980_s21] sm:$0x3] %vm1083_vm1, %v1081_v23 }
 0x3d8   : > { %v1102_v24 = vrot.slane %v1101_v22, 1 }
 0x3d9   : > { %1651 = shalt.err (!%p1648_p13)
}
 0x3da   : > { %1371 = dma.vmem_to_hbm [thread:$0]  (%p1919_p0), %s1136_s26, 32, %s1138_s7, %s1117_s16   ;;  %v1110_v25 = vadd.f32 %v1109_v20, %v1108_v16  ;;  %v1103_v26 = vadd.f32 %v1102_v24, %v1101_v22 }
 0x3db   : > { %s1122_s21 = scalar_lea.sflag [#allocation15], %s1952_s28  ;;  %s1666_s18 = sshra.s32 %s1153_s19, 4  ;;  %s1667_s18 = int_to_ptr.hbm [resolvable:$true] %s1666_s18 }
 0x3dc   : > { %v1113_v27 = vsel %vm1080_vm6, %v1110_v25, %v1103_v26  ;;  %s1668_s4 = scalar_lea.hbm %s1667_s18, 2  ;;  %s1672_s26 = scalar_lea.hbm %s2150_s11, 6 }
 0x3dd   : > { %1115 = vst.msk [vmem:[%s1982_s27] sm:$0x3] %vm1083_vm1, %v1113_v27  ;;  %p1669_p3 = scmp.ne.s32.totalorder %s1667_s18, %s1668_s4  ;;  %p1673_p2 = scmp.lt.s32.totalorder %s1667_s18, %s2150_s11 }
 0x3de   : > { %p1674_p1 = scmp.lt.s32.totalorder %s1672_s26, %s1668_s4 }
 0x3df   : > { %p1670_p5 = pnand %p1669_p3, %p1919_p0 }
 0x3e0   : > { %p1675_p4 = por %p1674_p1, %p1673_p2 }
 0x3e1   : > { %p1671_p7 = pneg %p1670_p5 }
 0x3e3   : > { %p1676_p8 = pnand %p1675_p4, %p1671_p7 }
 0x3e5   : > { %1679 = shalt.err (!%p1676_p8)
}
 0x3e6   : > { %1372 = dma.vmem_to_hbm [thread:$0]  (%p1919_p0), %s1151_s2, 32, %s1153_s19, %s1122_s21  }
 0x3e7 PF: > { %s2178_s28 = sld [smem:[#allocation22_spill]]  ;;  %p1403_p9 = scmp.ge.s32.totalorder %s1750_s9, 2 }
 0x3e9   : > { %p1390_p10 = pnand %p1403_p9, %p1869_p6 }
 0x3eb   : > { %p1391_p11 = pneg %p1390_p10 }
 0x3ed   : > { %s1164_s14 = sand.u32 1, %s2178_s28  }
 0x3ee   : > { %s1165_s13 = scalar_lea.sflag [#allocation7], %s1164_s14 }
 0x3ef   : > { %1721 = dma.done.wait (%p1391_p11), %s1165_s13, 32  }
 0x3f0   : > { %1723 = vsyncadd (%p1391_p11), %s1165_s13, 4294967264  ;;  %s1175_s15 = scalar_lea.sflag [#allocation15], %s1164_s14 }
 0x3f1   : > { %1725 = dma.done.wait (%p1391_p11), %s1175_s15, 32  }
 0x3f2   : > { %1727 = vsyncadd (%p1391_p11), %s1175_s15, 4294967264  ;;  %s37_s9 = sadd.s32 1, %s1750_s9   ;;  %s2180_s25 = sld [smem:[#allocation24_spill]] }
 0x3f3   : > { %p34_p12 = scmp.ge.s32.totalorder %s37_s9, 5   ;;  %s2181_s21 = smov %s1734_s22 }
 0x3f4   : > { %s2182_s22 = smov %s1738_s23  ;;  %s2183_s23 = smov %s1933_s17 }
 0x3f5   : > { %s2184_s7 = smov %s1746_s24  ;;  %36 = sbr.rel (!%p34_p12) target bundleno = 14 (0xe), region = 140 }
 0x3f8   : > { %s2185_s24 = smov %s2180_s25 }
 0x3fa   :  { %1181 = vsyncpa [#allocation6], 1 }
 0x3fb   :  { %1183 = vsyncpa [#allocation6 + $0x1], 1 }
 0x3fc   :  { %1184 = vsyncpa [#allocation9], 1 }
 0x3fd   :  { %1186 = vsyncpa [#allocation9 + $0x1], 1 }
 0x3fe   :  { %1187 = vsyncpa [#allocation12], 1 }
 0x3ff   :  { %1188 = vsyncpa [#allocation7], 1 }
 0x400   :  { %1190 = vsyncpa [#allocation7 + $0x1], 1 }
 0x401   :  { %1191 = vsyncpa [#allocation15], 1 }
 0x402   :  { %1193 = vsyncpa [#allocation15 + $0x1], 1 }

</bundles_post_ra>
